<compile_context>
chip_gen: v7x
topology: tpu7x:2x2x1
jax: 0.10.0
libtpu: 0.0.40
codegen_flags: <defaults>
</compile_context>

<pallas_src>
import math

import jax
import jax.numpy as jnp
from jax.experimental import pallas as pl
from jax.experimental.pallas import tpu as pltpu

LEAKY_MAIN = 0.2   # self.relu   = LeakyReLU(0.2)
LEAKY_VERT = 0.1   # self.v_relu = LeakyReLU(0.1)
BN_EPS = 1e-5
BIAS_SCALE = 1.0
OBJ_SCALE = 1.0
ELU_ALPHA = 1.0


def _leaky(x, slope):
    return jnp.where(x > 0, x, slope * x)


def _round_up(x, m):
    return (x + m - 1) // m * m


def _nbytes(shape, dtype):
    return math.prod(shape) * jnp.dtype(dtype).itemsize


def _batchnorm_train(h, mask, inv_b, gamma, beta):
    """PyTorch BatchNorm1d (training mode, biased variance), masked to real rows."""
    hm = h * mask
    mu = jnp.sum(hm, axis=0, keepdims=True) * inv_b
    ex2 = jnp.sum(hm * h, axis=0, keepdims=True) * inv_b
    var = jnp.maximum(ex2 - mu * mu, 0.0)          # clamp cancellation error
    return (h - mu) * jax.lax.rsqrt(var + BN_EPS) * gamma + beta


# ---------------------------------------------------------------------------
# Kernel 1: fc1 -> LeakyReLU(0.2) -> BN1 -> fc2 -> LeakyReLU(0.2) -> BN2
# Runs once (grid=(1,)); output h is the bf16 LHS for the fc_bias kernel.
# ---------------------------------------------------------------------------
def hidden_kernel(b_ref, z_ref, w1_ref, w2_ref, p_ref, h_ref):
    b_real = b_ref[0]
    bp = z_ref.shape[0]
    row = jax.lax.broadcasted_iota(jnp.int32, (bp, 1), 0)
    mask = (row < b_real).astype(jnp.float32)      # zero out padded batch rows
    inv_b = 1.0 / b_real.astype(jnp.float32)

    # packed params: rows 0..5 = b1, g1, be1, b2, g2, be2
    b1 = p_ref[0:1, :]
    g1 = p_ref[1:2, :]
    be1 = p_ref[2:3, :]
    b2 = p_ref[3:4, :]
    g2 = p_ref[4:5, :]
    be2 = p_ref[5:6, :]

    h = jnp.dot(z_ref[...], w1_ref[...], preferred_element_type=jnp.float32)
    h = _leaky(h + b1, LEAKY_MAIN)
    h = _batchnorm_train(h, mask, inv_b, g1, be1)

    h = jnp.dot(h.astype(w2_ref.dtype), w2_ref[...],
                preferred_element_type=jnp.float32)
    h = _leaky(h + b2, LEAKY_MAIN)
    h = _batchnorm_train(h, mask, inv_b, g2, be2)

    h_ref[...] = h.astype(h_ref.dtype)


# ---------------------------------------------------------------------------
# Kernel 2: fc_bias tile matmul + sphere deformation epilogue.
# Gridded ("parallel") over lane-dense vertex tiles of width tn.
# ---------------------------------------------------------------------------
def vertex_kernel(h_ref, w3_ref, b3_ref, base_ref, o_ref):
    bias = jnp.dot(h_ref[...], w3_ref[...], preferred_element_type=jnp.float32)
    bias = (bias + b3_ref[...]) * BIAS_SCALE            # (Bp, TN)

    base = base_ref[...] * OBJ_SCALE                    # (1, TN); padded cols are 0
    sign = jnp.sign(base)

    t = jnp.abs(base) + bias
    elu = jnp.where(t > 0, t, ELU_ALPHA * (jnp.exp(t) - 1.0))   # F.elu(t, alpha)
    v = _leaky(-elu + ELU_ALPHA, LEAKY_VERT)                    # LeakyReLU(0.1)
    o_ref[...] = (-v) * sign * 0.5


def mesh_generator_forward(z, params, sphere_vs, *, tile_n=2048):
    b_real, z_dim = z.shape
    hidden = params["w1"].shape[1]
    nv = sphere_vs.shape[0]
    nv3 = nv * 3

    # ---- padding: batch -> mult of 16 (bf16 sublane packing), NV*3 -> lane tiles ----
    bp = _round_up(b_real, 16)
    nv3_128 = _round_up(nv3, 128)
    tn = min(tile_n, nv3_128)                     # lane-dense tile, multiple of 128
    num_tiles = pl.cdiv(nv3_128, tn)
    if num_tiles > 1 and num_tiles % 2 == 1:      # prefer even tiles (v7x megacore)
        tn = _round_up(pl.cdiv(nv3_128, num_tiles + 1), 128)
        num_tiles = pl.cdiv(nv3_128, tn)
    nv3p = num_tiles * tn

    # ---- host-side packing / casting ----
    w1 = params["w1"].astype(jnp.bfloat16)
    w2 = params["w2"].astype(jnp.bfloat16)
    z_p = jnp.zeros((bp, z_dim), jnp.bfloat16).at[:b_real].set(z.astype(jnp.bfloat16))

    p_packed = jnp.zeros((8, hidden), jnp.float32)
    p_packed = p_packed.at[0:1].set(params["b1"])
    p_packed = p_packed.at[1:2].set(params["g1"])
    p_packed = p_packed.at[2:3].set(params["be1"])
    p_packed = p_packed.at[3:4].set(params["b2"])
    p_packed = p_packed.at[4:5].set(params["g2"])
    p_packed = p_packed.at[5:6].set(params["be2"])

    w3_p = jnp.zeros((hidden, nv3p), jnp.bfloat16).at[:, :nv3].set(
        params["w3"].astype(jnp.bfloat16))
    b3_p = jnp.zeros((1, nv3p), jnp.float32).at[:, :nv3].set(params["b3"])
    base_p = jnp.zeros((1, nv3p), jnp.float32).at[:, :nv3].set(
        sphere_vs.reshape(1, nv3).astype(jnp.float32))

    b_arr = jnp.asarray([b_real], jnp.int32)      # SMEM scalar (no recompile per B)

    # ================= kernel 1: hidden features h (runs once) =================
    def whole(shape):
        return pl.BlockSpec(shape, lambda i, b: (0,) * len(shape))

    h_block_bytes = (
        _nbytes((bp, z_dim), jnp.bfloat16)
        + _nbytes((z_dim, hidden), jnp.bfloat16)
        + _nbytes((hidden, hidden), jnp.bfloat16)
        + _nbytes((8, hidden), jnp.float32)
        + _nbytes((bp, hidden), jnp.bfloat16)
    )
    h_cost = pl.CostEstimate(
        flops=2 * bp * (z_dim * hidden + hidden * hidden),
        transcendentals=2 * hidden,
        bytes_accessed=h_block_bytes,
    )
    h = pl.pallas_call(
        hidden_kernel,
        out_shape=jax.ShapeDtypeStruct((bp, hidden), jnp.bfloat16),
        grid_spec=pltpu.PrefetchScalarGridSpec(
            num_scalar_prefetch=1,
            grid=(1,),
            in_specs=[
                whole((bp, z_dim)),          # z
                whole((z_dim, hidden)),      # w1
                whole((hidden, hidden)),     # w2
                whole((8, hidden)),          # packed b1/g1/be1/b2/g2/be2
            ],
            out_specs=whole((bp, hidden)),
        ),
        compiler_params=pltpu.CompilerParams(
            dimension_semantics=("arbitrary",),
            vmem_limit_bytes=int(min(48 << 20, 2 * h_block_bytes + (4 << 20))),
        ),
        cost_estimate=h_cost,
    )(b_arr, z_p, w1, w2, p_packed)

    # ============ kernel 2: fc_bias tiles + deformation ("parallel") ============
    v_block_bytes = (
        _nbytes((bp, hidden), jnp.bfloat16)
        + _nbytes((hidden, tn), jnp.bfloat16)
        + 2 * _nbytes((1, tn), jnp.float32)
        + _nbytes((bp, tn), jnp.float32)
    )
    v_cost = pl.CostEstimate(
        flops=2 * bp * hidden * nv3p,
        transcendentals=bp * nv3p,
        bytes_accessed=(_nbytes((bp, hidden), jnp.bfloat16)
                        + _nbytes((hidden, nv3p), jnp.bfloat16)
                        + 2 * _nbytes((1, nv3p), jnp.float32)
                        + _nbytes((bp, nv3p), jnp.float32)),
    )
    out = pl.pallas_call(
        vertex_kernel,
        out_shape=jax.ShapeDtypeStruct((bp, nv3p), jnp.float32),
        grid_spec=pltpu.PrefetchScalarGridSpec(
            num_scalar_prefetch=0,
            grid=(num_tiles,),
            in_specs=[
                pl.BlockSpec((bp, hidden), lambda j: (0, 0)),   # h (grid-invariant)
                pl.BlockSpec((hidden, tn), lambda j: (0, j)),   # w3 tile
                pl.BlockSpec((1, tn), lambda j: (0, j)),        # b3 tile
                pl.BlockSpec((1, tn), lambda j: (0, j)),        # base tile
            ],
            out_specs=pl.BlockSpec((bp, tn), lambda j: (0, j)),
        ),
        compiler_params=pltpu.CompilerParams(
            dimension_semantics=("parallel",),
            vmem_limit_bytes=int(min(48 << 20, 2 * v_block_bytes + (4 << 20))),
        ),
        cost_estimate=v_cost,
    )(h, w3_p, b3_p, base_p)

    return out[:b_real, :nv3].reshape(b_real, nv, 3)


def mesh_generator_reference(z, params, sphere_vs):
    """Pure-JAX reference with the same bf16-weight rounding as the kernels."""
    def bnorm(h, g, be):
        mu = jnp.mean(h, axis=0, keepdims=True)
        var = jnp.maximum(jnp.mean(h * h, axis=0, keepdims=True) - mu * mu, 0.0)
        return (h - mu) * jax.lax.rsqrt(var + BN_EPS) * g + be

    w1 = params["w1"].astype(jnp.bfloat16)
    w2 = params["w2"].astype(jnp.bfloat16)
    w3 = params["w3"].astype(jnp.bfloat16)

    h = jnp.dot(z.astype(jnp.bfloat16), w1,
                preferred_element_type=jnp.float32) + params["b1"]
    h = bnorm(_leaky(h, LEAKY_MAIN), params["g1"], params["be1"])
    h = jnp.dot(h.astype(jnp.bfloat16), w2,
                preferred_element_type=jnp.float32) + params["b2"]
    h = bnorm(_leaky(h, LEAKY_MAIN), params["g2"], params["be2"])
    bias = (jnp.dot(h.astype(jnp.bfloat16), w3,
                    preferred_element_type=jnp.float32) + params["b3"]) * BIAS_SCALE

    base = sphere_vs.reshape(1, -1).astype(jnp.float32) * OBJ_SCALE
    sign = jnp.sign(base)
    t = jnp.abs(base) + bias
    elu = jnp.where(t > 0, t, ELU_ALPHA * (jnp.exp(t) - 1.0))
    v = _leaky(-elu + ELU_ALPHA, LEAKY_VERT)
    return ((-v) * sign * 0.5).reshape(z.shape[0], -1, 3)


def init_params(key, z_dim, hidden, nv3):
    """Deterministic synthetic init matching the PyTorch module's parameter shapes."""
    ks = jax.random.split(key, 6)

    def linear(kw, kb, fan_in, fan_out):
        bound = 1.0 / (fan_in ** 0.5)
        w = jax.random.uniform(kw, (fan_in, fan_out), jnp.float32, -bound, bound)
        b = jax.random.uniform(kb, (1, fan_out), jnp.float32, -bound, bound)
        return w, b

    w1, b1 = linear(ks[0], ks[1], z_dim, hidden)     # fc1
    w2, b2 = linear(ks[2], ks[3], hidden, hidden)    # fc2
    w3, b3 = linear(ks[4], ks[5], hidden, nv3)       # fc_bias

    return {
        "w1": w1, "b1": b1,
        "g1": jnp.ones((1, hidden), jnp.float32), "be1": jnp.zeros((1, hidden), jnp.float32),
        "w2": w2, "b2": b2,
        "g2": jnp.ones((1, hidden), jnp.float32), "be2": jnp.zeros((1, hidden), jnp.float32),
        "w3": w3, "b3": b3,
    }


def make_sphere_vertices(key, num_vertices):
    # TODO(synk): trimesh.creation.icosphere has no in-script equivalent; use
    # deterministic unit-sphere points (normalized Gaussians) as the template mesh.
    pts = jax.random.normal(key, (num_vertices, 3), jnp.float32)
    return pts / (jnp.linalg.norm(pts, axis=-1, keepdims=True) + 1e-8)


if __name__ == "__main__":
    BATCH = 4
    Z_DIM = 32          # scaled-down z_dim (module default 512)
    HIDDEN = 128        # scaled-down hidden width (module default 1024)
    NUM_VERTICES = 42   # icosphere-like small vertex count

    key = jax.random.PRNGKey(0)
    k_z, k_p, k_s = jax.random.split(key, 3)

    z = jax.random.normal(k_z, (BATCH, Z_DIM), jnp.float32)
    params = init_params(k_p, Z_DIM, HIDDEN, NUM_VERTICES * 3)
    sphere_vs = make_sphere_vertices(k_s, NUM_VERTICES)

    vertices = mesh_generator_forward(z, params, sphere_vs)
    vertices = jax.block_until_ready(vertices)

    ref = jax.block_until_ready(mesh_generator_reference(z, params, sphere_vs))

    assert vertices.shape == (BATCH, NUM_VERTICES, 3)
    assert bool(jnp.all(jnp.isfinite(vertices)))
    assert bool(jnp.allclose(vertices, ref, atol=1e-2, rtol=1e-2))
    print("KERNEL_OK")
</pallas_src>

<mosaic_0001>
module attributes {stable_mosaic.version = 11 : i64} {
  func.func @hidden_kernel(%arg0: i32, %arg1: memref<1xi32, #tpu.memory_space<smem>>, %arg2: memref<16x32xbf16, #tpu.memory_space<vmem>>, %arg3: memref<32x128xbf16, #tpu.memory_space<vmem>>, %arg4: memref<128x128xbf16, #tpu.memory_space<vmem>>, %arg5: memref<8x128xf32, #tpu.memory_space<vmem>>, %arg6: memref<16x128xbf16, #tpu.memory_space<vmem>>) attributes {dimension_semantics = [#tpu.dimension_semantics<arbitrary>], iteration_bounds = array<i64: 1>, scalar_prefetch = 1 : i64, scratch_operands = 0 : i64, tpu.core_type = #tpu.core_type<tc>, window_params = [{pipeline_mode = #tpu.pipeline_mode<synchronous>, transform_indices = @transform_0, window_bounds = array<i64: 16, 32>}, {pipeline_mode = #tpu.pipeline_mode<synchronous>, transform_indices = @transform_1, window_bounds = array<i64: 32, 128>}, {pipeline_mode = #tpu.pipeline_mode<synchronous>, transform_indices = @transform_2, window_bounds = array<i64: 128, 128>}, {pipeline_mode = #tpu.pipeline_mode<synchronous>, transform_indices = @transform_3, window_bounds = array<i64: 8, 128>}, {pipeline_mode = #tpu.pipeline_mode<synchronous>, transform_indices = @transform_4, window_bounds = array<i64: 16, 128>}]} {
    %c0 = arith.constant 0 : index
    %0 = memref.load %arg1[%c0] : memref<1xi32, #tpu.memory_space<smem>>
    %1 = tpu.iota {dimensions = array<i32: 0>} : vector<16x1xi32>
    %2 = vector.broadcast %0 : i32 to vector<16x1xi32>
    %3 = arith.cmpi slt, %1, %2 : vector<16x1xi32>
    %4 = arith.extui %3 : vector<16x1xi1> to vector<16x1xi32>
    %5 = arith.sitofp %4 : vector<16x1xi32> to vector<16x1xf32>
    %6 = arith.sitofp %0 : i32 to f32
    %cst = arith.constant 1.000000e+00 : f32
    %7 = arith.divf %cst, %6 : f32
    %c0_0 = arith.constant 0 : index
    %c0_1 = arith.constant 0 : index
    %8 = vector.load %arg5[%c0_0, %c0_1] : memref<8x128xf32, #tpu.memory_space<vmem>>, vector<1x128xf32>
    %c1 = arith.constant 1 : index
    %c0_2 = arith.constant 0 : index
    %9 = vector.load %arg5[%c1, %c0_2] : memref<8x128xf32, #tpu.memory_space<vmem>>, vector<1x128xf32>
    %c2 = arith.constant 2 : index
    %c0_3 = arith.constant 0 : index
    %10 = vector.load %arg5[%c2, %c0_3] : memref<8x128xf32, #tpu.memory_space<vmem>>, vector<1x128xf32>
    %c3 = arith.constant 3 : index
    %c0_4 = arith.constant 0 : index
    %11 = vector.load %arg5[%c3, %c0_4] : memref<8x128xf32, #tpu.memory_space<vmem>>, vector<1x128xf32>
    %c4 = arith.constant 4 : index
    %c0_5 = arith.constant 0 : index
    %12 = vector.load %arg5[%c4, %c0_5] : memref<8x128xf32, #tpu.memory_space<vmem>>, vector<1x128xf32>
    %c5 = arith.constant 5 : index
    %c0_6 = arith.constant 0 : index
    %13 = vector.load %arg5[%c5, %c0_6] : memref<8x128xf32, #tpu.memory_space<vmem>>, vector<1x128xf32>
    %c0_7 = arith.constant 0 : index
    %c0_8 = arith.constant 0 : index
    %14 = vector.load %arg2[%c0_7, %c0_8] : memref<16x32xbf16, #tpu.memory_space<vmem>>, vector<16x32xbf16>
    %c0_9 = arith.constant 0 : index
    %c0_10 = arith.constant 0 : index
    %15 = vector.load %arg3[%c0_9, %c0_10] : memref<32x128xbf16, #tpu.memory_space<vmem>>, vector<32x128xbf16>
    %cst_11 = arith.constant dense<0.000000e+00> : vector<16x128xf32>
    %16 = tpu.matmul %14, %15, %cst_11 {dimension_numbers = #tpu.dot_dimension_numbers<[1], [0], [0], [1], [0, 0, 1, 1], [], []>} : vector<16x32xbf16>, vector<32x128xbf16>, vector<16x128xf32> -> vector<16x128xf32>
    %17 = vector.broadcast %8 : vector<1x128xf32> to vector<16x128xf32>
    %18 = arith.addf %16, %17 : vector<16x128xf32>
    %cst_12 = arith.constant 0.000000e+00 : f32
    %19 = vector.broadcast %cst_12 : f32 to vector<16x128xf32>
    %20 = arith.cmpf ogt, %18, %19 : vector<16x128xf32>
    %cst_13 = arith.constant 2.000000e-01 : f32
    %21 = vector.broadcast %cst_13 : f32 to vector<16x128xf32>
    %22 = arith.mulf %21, %18 : vector<16x128xf32>
    %23 = arith.select %20, %18, %22 : vector<16x128xi1>, vector<16x128xf32>
    %24 = vector.broadcast %5 : vector<16x1xf32> to vector<16x128xf32>
    %25 = arith.mulf %23, %24 : vector<16x128xf32>
    %cst_14 = arith.constant dense<0.000000e+00> : vector<128xf32>
    %26 = vector.multi_reduction <add>, %25, %cst_14 [0] : vector<16x128xf32> to vector<128xf32>
    %27 = vector.shape_cast %26 : vector<128xf32> to vector<1x128xf32>
    %28 = vector.broadcast %7 : f32 to vector<1x128xf32>
    %29 = arith.mulf %27, %28 : vector<1x128xf32>
    %30 = arith.mulf %25, %23 : vector<16x128xf32>
    %cst_15 = arith.constant dense<0.000000e+00> : vector<128xf32>
    %31 = vector.multi_reduction <add>, %30, %cst_15 [0] : vector<16x128xf32> to vector<128xf32>
    %32 = vector.shape_cast %31 : vector<128xf32> to vector<1x128xf32>
    %33 = vector.broadcast %7 : f32 to vector<1x128xf32>
    %34 = arith.mulf %32, %33 : vector<1x128xf32>
    %35 = arith.mulf %29, %29 : vector<1x128xf32>
    %36 = arith.subf %34, %35 : vector<1x128xf32>
    %cst_16 = arith.constant 0.000000e+00 : f32
    %37 = vector.broadcast %cst_16 : f32 to vector<1x128xf32>
    %38 = arith.maximumf %36, %37 : vector<1x128xf32>
    %39 = vector.broadcast %29 : vector<1x128xf32> to vector<16x128xf32>
    %40 = arith.subf %23, %39 : vector<16x128xf32>
    %cst_17 = arith.constant 9.99999974E-6 : f32
    %41 = vector.broadcast %cst_17 : f32 to vector<1x128xf32>
    %42 = arith.addf %38, %41 : vector<1x128xf32>
    %43 = math.rsqrt %42 : vector<1x128xf32>
    %44 = vector.broadcast %43 : vector<1x128xf32> to vector<16x128xf32>
    %45 = arith.mulf %40, %44 : vector<16x128xf32>
    %46 = vector.broadcast %9 : vector<1x128xf32> to vector<16x128xf32>
    %47 = arith.mulf %45, %46 : vector<16x128xf32>
    %48 = vector.broadcast %10 : vector<1x128xf32> to vector<16x128xf32>
    %49 = arith.addf %47, %48 : vector<16x128xf32>
    %50 = arith.truncf %49 : vector<16x128xf32> to vector<16x128xbf16>
    %c0_18 = arith.constant 0 : index
    %c0_19 = arith.constant 0 : index
    %51 = vector.load %arg4[%c0_18, %c0_19] : memref<128x128xbf16, #tpu.memory_space<vmem>>, vector<128x128xbf16>
    %cst_20 = arith.constant dense<0.000000e+00> : vector<16x128xf32>
    %52 = tpu.matmul %50, %51, %cst_20 {dimension_numbers = #tpu.dot_dimension_numbers<[1], [0], [0], [1], [0, 0, 1, 1], [], []>} : vector<16x128xbf16>, vector<128x128xbf16>, vector<16x128xf32> -> vector<16x128xf32>
    %53 = vector.broadcast %11 : vector<1x128xf32> to vector<16x128xf32>
    %54 = arith.addf %52, %53 : vector<16x128xf32>
    %cst_21 = arith.constant 0.000000e+00 : f32
    %55 = vector.broadcast %cst_21 : f32 to vector<16x128xf32>
    %56 = arith.cmpf ogt, %54, %55 : vector<16x128xf32>
    %cst_22 = arith.constant 2.000000e-01 : f32
    %57 = vector.broadcast %cst_22 : f32 to vector<16x128xf32>
    %58 = arith.mulf %57, %54 : vector<16x128xf32>
    %59 = arith.select %56, %54, %58 : vector<16x128xi1>, vector<16x128xf32>
    %60 = vector.broadcast %5 : vector<16x1xf32> to vector<16x128xf32>
    %61 = arith.mulf %59, %60 : vector<16x128xf32>
    %cst_23 = arith.constant dense<0.000000e+00> : vector<128xf32>
    %62 = vector.multi_reduction <add>, %61, %cst_23 [0] : vector<16x128xf32> to vector<128xf32>
    %63 = vector.shape_cast %62 : vector<128xf32> to vector<1x128xf32>
    %64 = vector.broadcast %7 : f32 to vector<1x128xf32>
    %65 = arith.mulf %63, %64 : vector<1x128xf32>
    %66 = arith.mulf %61, %59 : vector<16x128xf32>
    %cst_24 = arith.constant dense<0.000000e+00> : vector<128xf32>
    %67 = vector.multi_reduction <add>, %66, %cst_24 [0] : vector<16x128xf32> to vector<128xf32>
    %68 = vector.shape_cast %67 : vector<128xf32> to vector<1x128xf32>
    %69 = vector.broadcast %7 : f32 to vector<1x128xf32>
    %70 = arith.mulf %68, %69 : vector<1x128xf32>
    %71 = arith.mulf %65, %65 : vector<1x128xf32>
    %72 = arith.subf %70, %71 : vector<1x128xf32>
    %cst_25 = arith.constant 0.000000e+00 : f32
    %73 = vector.broadcast %cst_25 : f32 to vector<1x128xf32>
    %74 = arith.maximumf %72, %73 : vector<1x128xf32>
    %75 = vector.broadcast %65 : vector<1x128xf32> to vector<16x128xf32>
    %76 = arith.subf %59, %75 : vector<16x128xf32>
    %cst_26 = arith.constant 9.99999974E-6 : f32
    %77 = vector.broadcast %cst_26 : f32 to vector<1x128xf32>
    %78 = arith.addf %74, %77 : vector<1x128xf32>
    %79 = math.rsqrt %78 : vector<1x128xf32>
    %80 = vector.broadcast %79 : vector<1x128xf32> to vector<16x128xf32>
    %81 = arith.mulf %76, %80 : vector<16x128xf32>
    %82 = vector.broadcast %12 : vector<1x128xf32> to vector<16x128xf32>
    %83 = arith.mulf %81, %82 : vector<16x128xf32>
    %84 = vector.broadcast %13 : vector<1x128xf32> to vector<16x128xf32>
    %85 = arith.addf %83, %84 : vector<16x128xf32>
    %86 = arith.truncf %85 : vector<16x128xf32> to vector<16x128xbf16>
    %c0_27 = arith.constant 0 : index
    %c0_28 = arith.constant 0 : index
    %87 = vector.load %arg6[%c0_27, %c0_28] : memref<16x128xbf16, #tpu.memory_space<vmem>>, vector<16x128xbf16>
    tpu.vector_store %arg6[%c0_27, %c0_28], %86 {strides = array<i32>} : memref<16x128xbf16, #tpu.memory_space<vmem>>, vector<16x128xbf16>,
    return
  }
  func.func @transform_0(%arg0: i32, %arg1: memref<1xi32, #tpu.memory_space<smem>>) -> (i32, i32) {
    %c0_i32 = arith.constant 0 : i32
    %c0_i32_0 = arith.constant 0 : i32
    %c0_i32_1 = arith.constant 0 : i32
    return %c0_i32, %c0_i32_0 : i32, i32
  }
  func.func @transform_1(%arg0: i32, %arg1: memref<1xi32, #tpu.memory_space<smem>>) -> (i32, i32) {
    %c0_i32 = arith.constant 0 : i32
    %c0_i32_0 = arith.constant 0 : i32
    %c0_i32_1 = arith.constant 0 : i32
    return %c0_i32, %c0_i32_0 : i32, i32
  }
  func.func @transform_2(%arg0: i32, %arg1: memref<1xi32, #tpu.memory_space<smem>>) -> (i32, i32) {
    %c0_i32 = arith.constant 0 : i32
    %c0_i32_0 = arith.constant 0 : i32
    %c0_i32_1 = arith.constant 0 : i32
    return %c0_i32, %c0_i32_0 : i32, i32
  }
  func.func @transform_3(%arg0: i32, %arg1: memref<1xi32, #tpu.memory_space<smem>>) -> (i32, i32) {
    %c0_i32 = arith.constant 0 : i32
    %c0_i32_0 = arith.constant 0 : i32
    %c0_i32_1 = arith.constant 0 : i32
    return %c0_i32, %c0_i32_0 : i32, i32
  }
  func.func @transform_4(%arg0: i32, %arg1: memref<1xi32, #tpu.memory_space<smem>>) -> (i32, i32) {
    %c0_i32 = arith.constant 0 : i32
    %c0_i32_0 = arith.constant 0 : i32
    %c0_i32_1 = arith.constant 0 : i32
    return %c0_i32, %c0_i32_0 : i32, i32
  }
}

</mosaic_0001>

<bundles_post_ra>
// kernel: tpu_custom_call.1
= control target key start
LH: loop header
LB: loop body
LE: loop exit
PB: predicated region body
PF: predicated region fallthrough
CT: control target
= control target key end

     0   :  { %11 = vsyncpa [#allocation5], 0  ;;  %s707_s0 = inlined_call_operand.<no memory space> [shape: s32[1], index: 0, kind: input, shape index: {}]   ;;  %s708_s1 = inlined_call_operand.hbm [shape: bf16[16,32], index: 1, kind: input, shape index: {}]   ;;  %s709_s2 = inlined_call_operand.hbm [shape: bf16[32,128], index: 2, kind: input, shape index: {}]   ;;  %s710_s3 = inlined_call_operand.hbm [shape: bf16[128,128], index: 3, kind: input, shape index: {}]   ;;  %s711_s4 = inlined_call_operand.vmem [shape: f32[8,128], index: 4, kind: input, shape index: {}]   ;;  %s712_s5 = inlined_call_operand.hbm [shape: bf16[16,128], index: 5, kind: output, shape index: {}]  }
   0x1   :  { %12 = vsyncpa [#allocation8], 0 }
   0x2   :  { %13 = vsyncpa [#allocation6], 0  ;;  %s578_s18 = smov [#allocation7]   ;;  %s579_s20 = smov [#allocation4]  }
   0x3   :  { %s31_s19 = sshll.u32 %s578_s18, 4  ;;  %s19_s21 = sshll.u32 %s579_s20, 4  ;;  %s32_s19 = int_to_ptr.vmem [resolvable:$true] %s31_s19  ;;  %s616_s21 = int_to_ptr.vmem [resolvable:$true] %s19_s21 }
   0x4   :  { %s484_s24 = scalar_lea.hbm %s709_s2, 256 }
   0x5   :  { %p485_p0 = scmp.ne.s32.totalorder %s709_s2, %s484_s24  ;;  %p488_p1 = scmp.lt.u32.totalorder %s484_s24, %s709_s2 }
   0x7   :  { %p490_p2 = pnand %p488_p1, %p485_p0 }
   0x9   :  { %493 = shalt.err (!%p490_p2)
}
   0xa   :  { %s494_s29 = scalar_lea.vmem %s32_s19, 256  ;;  %p499_p4 = scmp.lt.s32.totalorder %s32_s19, %s32_s19 }
   0xb   :  { %p495_p3 = scmp.ne.s32.totalorder %s32_s19, %s494_s29  ;;  %p500_p5 = scmp.lt.s32.totalorder %s494_s29, %s494_s29 }
   0xd   :  { %p501_p6 = por %p500_p5, %p499_p4 }
   0xf   :  { %p502_p7 = pnand %p501_p6, %p495_p3 }
  0x11   :  { %505 = shalt.err (!%p502_p7)
}
  0x12   :  { %s580_s30 = smov 64   ;;  %s581_s6 = smov 4  }
  0x13   :  { %37 = dma.hbm_to_vmem [thread:$0]  %s709_s2, 256, %s32_s19, [#allocation8], %s580_s30, %s580_s30, %s581_s6  }
  0x14   :  { %s506_s11 = scalar_lea.hbm %s708_s1, 128 }
  0x15   :  { %p507_p8 = scmp.ne.s32.totalorder %s708_s1, %s506_s11  ;;  %p510_p9 = scmp.lt.u32.totalorder %s506_s11, %s708_s1 }
  0x17   :  { %p512_p10 = pnand %p510_p9, %p507_p8 }
  0x19   :  { %515 = shalt.err (!%p512_p10)
}
  0x1a   :  { %s516_s16 = scalar_lea.vmem %s616_s21, 128  ;;  %p521_p12 = scmp.lt.s32.totalorder %s616_s21, %s616_s21 }
  0x1b   :  { %p517_p11 = scmp.ne.s32.totalorder %s616_s21, %s516_s16  ;;  %p522_p13 = scmp.lt.s32.totalorder %s516_s16, %s516_s16 }
  0x1d   :  { %p523_p0 = por %p522_p13, %p521_p12 }
  0x1f   :  { %p524_p1 = pnand %p523_p0, %p517_p11 }
  0x21   :  { %527 = shalt.err (!%p524_p1)
}
  0x22   :  { %25 = dma.hbm_to_vmem [thread:$0]  %s708_s1, 128, %s616_s21, [#allocation5], %s580_s30, %s580_s30, %s581_s6  }
  0x23   :  { %s582_s18 = smov [#allocation9]   ;;  %s528_s23 = scalar_lea.hbm %s710_s3, 1024 }
  0x24   :  { %s43_s19 = sshll.u32 %s582_s18, 4  ;;  %p529_p2 = scmp.ne.s32.totalorder %s710_s3, %s528_s23  ;;  %s44_s19 = int_to_ptr.vmem [resolvable:$true] %s43_s19 }
  0x25   :  { %p532_p3 = scmp.lt.u32.totalorder %s528_s23, %s710_s3 }
  0x27   :  { %p534_p4 = pnand %p532_p3, %p529_p2 }
  0x29   :  { %537 = shalt.err (!%p534_p4)
}
  0x2a   :  { %s538_s28 = scalar_lea.vmem %s44_s19, 1024  ;;  %p543_p6 = scmp.lt.s32.totalorder %s44_s19, %s44_s19 }
  0x2b   :  { %p539_p5 = scmp.ne.s32.totalorder %s44_s19, %s538_s28  ;;  %p544_p7 = scmp.lt.s32.totalorder %s538_s28, %s538_s28 }
  0x2d   :  { %p545_p8 = por %p544_p7, %p543_p6 }
  0x2f   :  { %p546_p9 = pnand %p545_p8, %p539_p5 }
  0x31   :  { %549 = shalt.err (!%p546_p9)
}
  0x32   :  { %49 = dma.hbm_to_vmem [thread:$0]  %s710_s3, 1024, %s44_s19, [#allocation8], %s580_s30, %s580_s30, %s581_s6  }
  0x33   :  { %572 = dma.done.wait [#allocation5], 128  }
  0x34   :  { %573 = vsyncadd [#allocation5], 4294967168 }
  0x35   :  { %574 = dma.done.wait [#allocation8], 1280  }
  0x36   :  { %575 = vsyncadd [#allocation8], 4294966016  ;;  %s73_s8 = scvt.s32.f32 %s707_s0  ;;  %v583_v0 = vmov 0.0   ;;  %vm584_vm0 = vmmov 0   ;;  %v467_v2 = vld [vmem:[#allocation7] sm:$0xff]   ;;  %v468_v3 = vld [vmem:[#allocation7 + $0x8] sm:$0xff]   ;;  %v63_v14 = vlaneseq  ;;  %v66_v16 = vstv %s707_s0 }
  0x37   :  { %429 = vmatprep.subr.bf16.mxu0 %v583_v0  ;;  %433 = vmatprep.mubr.msk.bf16.mxu0 %vm584_vm0, %v583_v0  ;;  %v469_v4 = vld [vmem:[#allocation4] sm:$0xff]   ;;  %vm110_vm1 = vcmask 261120   ;;  %v470_v6 = vld [vmem:[#allocation9] sm:$0xff]   ;;  %v472_v8 = vld [vmem:[#allocation9 + $0x10] sm:$0xff]   ;;  %s585_s22 = smov [#allocation10]  }
  0x38   :  { %v74_v1 = vstv %s73_s8  ;;  %437 = vmatprep.subr.bf16.mxu1 %v583_v0  ;;  %453 = vmatprep.mubr.msk.bf16.mxu1 %vm584_vm0, %v583_v0  ;;  %v471_v7 = vld [vmem:[#allocation9 + $0x8] sm:$0xff]   ;;  %v473_v9 = vld [vmem:[#allocation9 + $0x18] sm:$0xff]   ;;  %v474_v10 = vld [vmem:[#allocation9 + $0x20] sm:$0xff]   ;;  %v64_v15 = vshrl.u32 %v63_v14, 7  ;;  %s375_s23 = sshll.u32 %s585_s22, 4  ;;  %s376_s23 = int_to_ptr.vmem [resolvable:$true] %s375_s23 }
  0x39   :  { %478 = vrcp.f32 %v74_v1  ;;  %430 = vmatpush3.bf16.msra.mxu0 %v467_v2  ;;  %438 = vmatpush3.bf16.msra.mxu1 %v470_v6  ;;  %v475_v11 = vld [vmem:[#allocation9 + $0x28] sm:$0xff]   ;;  %v476_v12 = vld [vmem:[#allocation9 + $0x30] sm:$0xff]   ;;  %v477_v13 = vld [vmem:[#allocation9 + $0x38] sm:$0xff]   ;;  %s550_s24 = scalar_lea.vmem %s376_s23, 128  ;;  %p555_p11 = scmp.lt.s32.totalorder %s376_s23, %s376_s23 }
  0x3a   :  { %431 = vmatprep.subr.bf16.mxu0 %v583_v0  ;;  %439 = vmatprep.subr.bf16.mxu1 %v583_v0  ;;  %v390_v17 = vld [vmem:[%s711_s4] ss:$0 sm:$0xff]  ;;  %v65_v18 = vadd.s32 8, %v64_v15  ;;  %vm67_vm2 = vcmp.lt.s32.totalorder %v64_v15, %v66_v16  ;;  %v395_v59 = vld [vmem:[%s711_s4 + $0x1] ss:$0 sm:$0xff]  ;;  %p551_p10 = scmp.ne.s32.totalorder %s376_s23, %s550_s24  ;;  %p556_p12 = scmp.lt.s32.totalorder %s550_s24, %s550_s24 }
  0x3b   :  { %v388_v23 = vsel %vm67_vm2, 1.0, %v583_v0  ;;  %v396_v62 = vld [vmem:[%s711_s4 + $0x2] ss:$0 sm:$0xff] }
  0x3c   :  { %vm68_vm3 = vcmp.lt.s32.totalorder %v65_v18, %v66_v16  ;;  %p557_p13 = por %p556_p12, %p555_p11 }
  0x3d   :  { %432 = vmatpush3.bf16.msra.mxu0 %v468_v3  ;;  %440 = vmatpush3.bf16.msra.mxu1 %v471_v7  ;;  %v389_v28 = vsel %vm68_vm3, 1.0, %v583_v0 }
  0x3e   :  { %441 = vmatprep.subr.bf16.mxu1 %v583_v0  ;;  %p558_p0 = pnand %p557_p13, %p551_p10 }
  0x40   :  { %434 = vmatmul.mubr.msk.bf16.vlgmr.msra.gmra.mrb[0].mxu0 %vm110_vm1, %v469_v4  ;;  %v397_v4 = vld [vmem:[%s711_s4 + $0x3] ss:$0 sm:$0xff] }
  0x41   :  { %442 = vmatpush3.bf16.msra.mxu1 %v472_v8 }
  0x42   :  { %443 = vmatprep.subr.bf16.mxu1 %v583_v0 }
  0x43   :  { %v479_v5 = vpop.eup %478 }
  0x44   :  { %457 = vpush %v479_v5 }
  0x45   :  { %444 = vmatpush3.bf16.msra.mxu1 %v473_v9 }
  0x46   :  { %445 = vmatprep.subr.bf16.mxu1 %v583_v0 }
  0x49   :  { %446 = vmatpush3.bf16.msra.mxu1 %v474_v10 }
  0x4a   :  { %447 = vmatprep.subr.bf16.mxu1 %v583_v0 }
  0x4d   :  { %448 = vmatpush3.bf16.msra.mxu1 %v475_v11 }
  0x4e   :  { %449 = vmatprep.subr.bf16.mxu1 %v583_v0 }
  0x51   :  { %450 = vmatpush3.bf16.msra.mxu1 %v476_v12 }
  0x52   :  { %451 = vmatprep.subr.bf16.mxu1 %v583_v0 }
  0x55   :  { %452 = vmatpush3.bf16.msra.mxu1 %v477_v13 }
  0x75   :  { %s458_s0 = spop %457 }
  0x76   :  { %v170_v46 = vstv %s458_s0 }
 0x113   :  { %v148_v19 = vpop.f32.mrb[0].mxu0 }
 0x114   :  { %v149_v20 = vadd.f32 %v390_v17, %v148_v19  ;;  %v435_v21 = vpop.f32.mrb[1].mxu0 }
 0x115   :  { %v151_v22 = vpop.f32.mrb[2].mxu0 }
 0x116   :  { %vm155_vm4 = vcmp.gt.f32.partialorder %v149_v20, 0.0  ;;  %v157_v24 = vmul.f32 0.2, %v149_v20  ;;  %v152_v25 = vadd.f32 %v390_v17, %v151_v22  ;;  %v436_v26 = vpop.f32.mrb[3].mxu0 }
 0x118   :  { %v159_v27 = vsel %vm155_vm4, %v149_v20, %v157_v24  ;;  %vm156_vm5 = vcmp.gt.f32.partialorder %v152_v25, 0.0  ;;  %v158_v29 = vmul.f32 0.2, %v152_v25 }
 0x119   :  { %v161_v30 = vmul.f32 %v388_v23, %v159_v27 }
 0x11a   :  { %v160_v31 = vsel %vm156_vm5, %v152_v25, %v158_v29 }
 0x11b   :  { %v162_v32 = vmul.f32 %v389_v28, %v160_v31  ;;  %v172_v33 = vmul.f32 %v161_v30, %v159_v27 }
 0x11d   :  { %v163_v34 = vadd.f32 %v162_v32, %v161_v30  ;;  %v173_v35 = vmul.f32 %v162_v32, %v160_v31 }
 0x11f   :  { %v164_v36 = vrot.slane %v163_v34, 4  ;;  %v174_v37 = vadd.f32 %v173_v35, %v172_v33 }
 0x121   :  { %v175_v38 = vrot.slane %v174_v37, 4  ;;  %v165_v39 = vadd.f32 %v164_v36, %v163_v34 }
 0x123   :  { %v166_v40 = vrot.slane %v165_v39, 2  ;;  %v176_v41 = vadd.f32 %v175_v38, %v174_v37 }
 0x125   :  { %v167_v42 = vadd.f32 %v166_v40, %v165_v39  ;;  %v177_v43 = vrot.slane %v176_v41, 2 }
 0x127   :  { %v168_v44 = vrot.slane %v167_v42, 1  ;;  %v178_v45 = vadd.f32 %v177_v43, %v176_v41 }
 0x129   :  { %v169_v47 = vadd.f32 %v168_v44, %v167_v42  ;;  %v179_v48 = vrot.slane %v178_v45, 1  ;;  %v406_v42 = vld [vmem:[%s711_s4 + $0x4] ss:$0 sm:$0xff] }
 0x12b   :  { %v171_v49 = vmul.f32 %v170_v46, %v169_v47  ;;  %v180_v50 = vadd.f32 %v179_v48, %v178_v45  ;;  %v407_v45 = vld [vmem:[%s711_s4 + $0x5] ss:$0 sm:$0xff] }
 0x12d   :  { %v181_v51 = vmul.f32 %v180_v50, %v170_v46  ;;  %v182_v52 = vmul.f32 %v171_v49, %v171_v49  ;;  %v185_v53 = vsub.f32 %v159_v27, %v171_v49  ;;  %v186_v54 = vsub.f32 %v160_v31, %v171_v49 }
 0x12f   :  { %v183_v55 = vsub.f32 %v181_v51, %v182_v52 }
 0x131   :  { %v184_v56 = vmax.f32 %v183_v55, 0.0 }
 0x133   :  { %v187_v57 = vadd.f32 1e-05, %v184_v56 }
 0x135   :  { %480 = vrsqrt.f32 %v187_v57 }
 0x13f   :  { %v481_v58 = vpop.eup %480 }
 0x140   :  { %v189_v60 = vmul.f32 %v481_v58, %v185_v53  ;;  %v190_v61 = vmul.f32 %v481_v58, %v186_v54 }
 0x142   :  { %v195_v63 = vmul.f32 %v395_v59, %v189_v60  ;;  %v196_v0 = vmul.f32 %v395_v59, %v190_v61 }
 0x144   :  { %v201_v1 = vadd.f32 %v396_v62, %v195_v63  ;;  %v202_v2 = vadd.f32 %v396_v62, %v196_v0 }
 0x146   :  { %v203_v3 = vpack.c.bf16 %v202_v2, %v201_v1 }
 0x148   :  { %454 = vmatmul.mubr.bf16.vlgmr.msra.gmra.mrb[0].mxu1 %v203_v3 }
 0x21b   :  { %v306_v5 = vpop.f32.mrb[0].mxu1 }
 0x21c   :  { %v307_v6 = vadd.f32 %v397_v4, %v306_v5  ;;  %v455_v7 = vpop.f32.mrb[1].mxu1 }
 0x21d   :  { %v309_v8 = vpop.f32.mrb[2].mxu1 }
 0x21e   :  { %vm313_vm6 = vcmp.gt.f32.partialorder %v307_v6, 0.0  ;;  %v315_v9 = vmul.f32 0.2, %v307_v6  ;;  %v310_v10 = vadd.f32 %v397_v4, %v309_v8  ;;  %v456_v11 = vpop.f32.mrb[3].mxu1 }
 0x220   :  { %v317_v12 = vsel %vm313_vm6, %v307_v6, %v315_v9  ;;  %vm314_vm7 = vcmp.gt.f32.partialorder %v310_v10, 0.0  ;;  %v316_v13 = vmul.f32 0.2, %v310_v10 }
 0x221   :  { %v319_v14 = vmul.f32 %v388_v23, %v317_v12 }
 0x222   :  { %v318_v15 = vsel %vm314_vm7, %v310_v10, %v316_v13 }
 0x223   :  { %v320_v16 = vmul.f32 %v389_v28, %v318_v15  ;;  %v329_v17 = vmul.f32 %v319_v14, %v317_v12 }
 0x225   :  { %v321_v18 = vadd.f32 %v320_v16, %v319_v14  ;;  %v330_v19 = vmul.f32 %v320_v16, %v318_v15 }
 0x227   :  { %v322_v20 = vrot.slane %v321_v18, 4  ;;  %v331_v21 = vadd.f32 %v330_v19, %v329_v17 }
 0x229   :  { %v323_v22 = vadd.f32 %v322_v20, %v321_v18  ;;  %v332_v24 = vrot.slane %v331_v21, 4 }
 0x22b   :  { %v324_v25 = vrot.slane %v323_v22, 2  ;;  %v333_v26 = vadd.f32 %v332_v24, %v331_v21 }
 0x22d   :  { %v325_v27 = vadd.f32 %v324_v25, %v323_v22  ;;  %v334_v29 = vrot.slane %v333_v26, 2 }
 0x22f   :  { %v326_v30 = vrot.slane %v325_v27, 1  ;;  %v335_v31 = vadd.f32 %v334_v29, %v333_v26 }
 0x231   :  { %v327_v32 = vadd.f32 %v326_v30, %v325_v27  ;;  %v336_v33 = vrot.slane %v335_v31, 1 }
 0x233   :  { %v328_v34 = vmul.f32 %v327_v32, %v170_v46  ;;  %v337_v35 = vadd.f32 %v336_v33, %v335_v31 }
 0x235   :  { %v338_v23 = vmul.f32 %v337_v35, %v170_v46  ;;  %v339_v36 = vmul.f32 %v328_v34, %v328_v34  ;;  %v343_v28 = vsub.f32 %v318_v15, %v328_v34  ;;  %v342_v37 = vsub.f32 %v317_v12, %v328_v34 }
 0x237   :  { %v340_v38 = vsub.f32 %v338_v23, %v339_v36 }
 0x239   :  { %v341_v39 = vmax.f32 %v340_v38, 0.0 }
 0x23b   :  { %v344_v40 = vadd.f32 1e-05, %v341_v39 }
 0x23d   :  { %482 = vrsqrt.f32 %v344_v40 }
 0x247   :  { %v483_v41 = vpop.eup %482 }
 0x248   :  { %v347_v43 = vmul.f32 %v483_v41, %v343_v28  ;;  %v346_v44 = vmul.f32 %v483_v41, %v342_v37 }
 0x24a   :  { %v352_v47 = vmul.f32 %v406_v42, %v346_v44  ;;  %v353_v46 = vmul.f32 %v406_v42, %v347_v43 }
 0x24c   :  { %v358_v48 = vadd.f32 %v407_v45, %v352_v47  ;;  %v359_v49 = vadd.f32 %v407_v45, %v353_v46 }
 0x24e   :  { %v415_v50 = vpack.c.bf16 %v359_v49, %v358_v48 }
 0x250   :  { %416 = vst [vmem:[#allocation10] sm:$0xff] %v415_v50  }
 0x251   :  { %561 = shalt.err (!%p558_p0)
}
 0x252   :  { %s562_s4 = scalar_lea.hbm %s712_s5, 128 }
 0x253   :  { %p563_p1 = scmp.ne.s32.totalorder %s712_s5, %s562_s4  ;;  %p566_p2 = scmp.lt.u32.totalorder %s562_s4, %s712_s5 }
 0x255   :  { %p568_p3 = pnand %p566_p2, %p563_p1 }
 0x257   :  { %571 = shalt.err (!%p568_p3)
}
 0x258   :  { %381 = dma.vmem_to_hbm [thread:$0]  %s376_s23, 128, %s712_s5, [#allocation6], %s580_s30, %s580_s30, %s581_s6  }
 0x259   :  { %576 = dma.done.wait [#allocation6], 128  }
 0x25a   :  { %577 = vsyncadd [#allocation6], 4294967168 }
 0x25b   :  { %385 = vsyncpa [#allocation5], 1 }
 0x25c   :  { %386 = vsyncpa [#allocation8], 1 }
 0x25d   :  { %387 = vsyncpa [#allocation6], 1 }

</bundles_post_ra>
